<compile_context>
chip_gen: v6e
topology: v6e:2x2x1
jax: 0.10.0
libtpu: 0.0.40
codegen_flags: <defaults>
</compile_context>

<pallas_src>
import functools
import math

import jax
import jax.numpy as jnp
import numpy as np
from jax.experimental import pallas as pl
from jax.experimental.pallas import tpu as pltpu


# ---------------------------------------------------------------------------
# Kernel
# ---------------------------------------------------------------------------

def _roll(x, shift, axis):
    size = x.shape[axis]
    return pltpu.roll(x, shift=shift % size, axis=axis)


def _sobel_loss_kernel(pred_ref, targ_ref, out_ref, *, w, hr):
    """pred_ref / targ_ref: (S, L) block.  L = r*w lanes packing r image rows;
    S = (images per block) * hr sublane rows (hr = H // r packed rows/image).
    out_ref: (1, 8, L) f32 block holding this step's lane-wise partial sums."""
    S, L = pred_ref.shape
    r = L // w

    # ---- boundary masks (hoisted: built once per grid step) ----------------
    lane = jax.lax.broadcasted_iota(jnp.int32, (S, L), 1)
    row = jax.lax.broadcasted_iota(jnp.int32, (S, L), 0)
    col = lane % w
    left_edge = col == 0                        # original column j == 0
    right_edge = col == w - 1                   # original column j == W-1
    if r > 1:
        k_first = lane < w                      # first row-segment of a packed row
        k_last = lane >= L - w                  # last row-segment of a packed row
        top_edge = jnp.logical_and(row % hr == 0, k_first)        # image row 0
        bot_edge = jnp.logical_and(row % hr == hr - 1, k_last)    # image row H-1
    else:
        top_edge = (row % hr) == 0
        bot_edge = (row % hr) == hr - 1

    # Shift helpers: value of the +/-1 neighbour, `fill` outside the image
    # (conv2d padding=1 semantics).  Rolls -> XLU slot; selects -> VPU slot.
    def shift_left(x, fill):                    # value from (i, j-1)
        return jnp.where(left_edge, fill, _roll(x, 1, 1))

    def shift_right(x, fill):                   # value from (i, j+1)
        return jnp.where(right_edge, fill, _roll(x, -1, 1))

    def shift_up(x, fill):                      # value from (i-1, j)
        if r > 1:
            y = _roll(x, w, 1)
            y = jnp.where(k_first, _roll(y, 1, 0), y)
        else:
            y = _roll(x, 1, 0)
        return jnp.where(top_edge, fill, y)

    def shift_down(x, fill):                    # value from (i+1, j)
        if r > 1:
            y = _roll(x, -w, 1)
            y = jnp.where(k_last, _roll(y, -1, 0), y)
        else:
            y = _roll(x, -1, 0)
        return jnp.where(bot_edge, fill, y)

    # Sobel on raw x with -1 padding.  Because the Sobel taps sum to zero,
    # edges((x+1)/2) == 0.5 * sqrt(gx(x)^2 + gy(x)^2 + 4e-6) exactly, with
    # out-of-image fills -1 (x), 0 (d) and -4 (sm).
    def edges_x2(ref):
        x = ref[...].astype(jnp.float32)
        xl = shift_left(x, -1.0)
        xr = shift_right(x, -1.0)
        d = xr - xl                             # [-1, 0, 1] along W
        sm = xl + 2.0 * x + xr                  # [ 1, 2, 1] along W
        gx = shift_up(d, 0.0) + 2.0 * d + shift_down(d, 0.0)
        gy = shift_down(sm, -4.0) - shift_up(sm, -4.0)
        return jnp.sqrt(gx * gx + gy * gy + 4e-6)

    diff = jnp.abs(edges_x2(pred_ref) - edges_x2(targ_ref))
    # VPU-only partial reduce: fold groups of 8 sublane rows; the 0.5 restores
    # the (x+1)/2 scaling.  Final cross-lane sum happens once in the wrapper.
    part = 0.5 * jnp.sum(diff.reshape(S // 8, 8, L), axis=0)
    out_ref[...] = part[None, :, :]


# ---------------------------------------------------------------------------
# Wrapper
# ---------------------------------------------------------------------------

def _vmem_capacity_bytes():
    try:
        info = pltpu.get_tpu_info()
        cap = getattr(info, "vmem_capacity_bytes", None)
        if cap:
            return int(cap)
    except Exception:
        pass
    return 64 * 1024 * 1024        # conservative (v7x-sized) fallback


def _plan(nc, h, w, itemsize):
    """Pick lane packing r, images-per-block kb, grid G and the VMEM limit."""
    # Lane packing: r consecutive image rows side by side (free contiguous reshape).
    r = 1
    if w < 128:
        for cand in range(1, min(h, 128 // w) + 1):
            if h % cand == 0:
                r = cand
    hr = h // r
    lane_w = r * w
    # Images-per-block granularity keeping S = kb*hr a multiple of 8
    # (sublane-aligned blocks + vectorized partial reduce).
    kh_unit = 8 // math.gcd(hr, 8)

    cap = _vmem_capacity_bytes()
    vmem_limit = min(int(cap * 0.75), 100 * 1024 * 1024)
    # VMEM budget: 2 inputs x 2 pipeline buffers (native dtype) + ~10 f32
    # block-sized intermediates inside edges().
    budget = int(cap * 0.5)
    e_max = max(1, budget // (4 * itemsize + 40))

    nc_up = ((nc + kh_unit - 1) // kh_unit) * kh_unit
    kb = max(kh_unit, (e_max // (h * w)) // kh_unit * kh_unit)
    kb = min(kb, nc_up)
    # Keep at least two grid steps so v7x's two TensorCores both get work.
    if nc > kh_unit:
        kb = min(kb, max(kh_unit, (((nc + 1) // 2) // kh_unit) * kh_unit))
    ncp = ((nc + kb - 1) // kb) * kb
    grid = ncp // kb
    return r, hr, lane_w, kb, ncp, grid, vmem_limit


def sobel_edge_loss(pred, target, reduction="mean"):
    """Pallas implementation of SobelEdgeLoss.forward (pred, target NCHW)."""
    assert pred.shape == target.shape and pred.ndim == 4
    n, c, h, w = pred.shape
    nc = n * c
    itemsize = jnp.dtype(pred.dtype).itemsize
    r, hr, lane_w, kb, ncp, grid, vmem_limit = _plan(nc, h, w, itemsize)

    # Keep native dtype for the DMA; the f32 cast happens inside the kernel.
    p = pred.reshape(nc, h, w)
    t = target.reshape(nc, h, w)
    if ncp > nc:
        # Zero-padded images are identical in pred/target -> contribute exactly 0.
        pad = ((0, ncp - nc), (0, 0), (0, 0))
        p = jnp.pad(p, pad)
        t = jnp.pad(t, pad)
    # Contiguous (free) reshape into the lane-packed 2D layout.
    p = p.reshape(ncp * hr, lane_w)
    t = t.reshape(ncp * hr, lane_w)

    s_blk = kb * hr
    kernel = functools.partial(_sobel_loss_kernel, w=w, hr=hr)
    partials = pl.pallas_call(
        kernel,
        out_shape=jax.ShapeDtypeStruct((grid, 8, lane_w), jnp.float32),
        grid_spec=pltpu.PrefetchScalarGridSpec(
            num_scalar_prefetch=0,
            grid=(grid,),
            in_specs=[
                pl.BlockSpec((s_blk, lane_w), lambda i: (i, 0)),
                pl.BlockSpec((s_blk, lane_w), lambda i: (i, 0)),
            ],
            out_specs=pl.BlockSpec((1, 8, lane_w), lambda i: (i, 0, 0)),
        ),
        compiler_params=pltpu.CompilerParams(
            dimension_semantics=("parallel",),       # megacore-shardable (v7x)
            vmem_limit_bytes=vmem_limit,
        ),
    )(p, t)

    total = jnp.sum(partials)
    if reduction == "mean":
        return total / (n * c * h * w)
    elif reduction == "sum":
        return total
    else:
        raise ValueError(f"unsupported reduction: {reduction}")


# ---------------------------------------------------------------------------
# Pure-JAX reference (direct 9-window formulation) for validation
# ---------------------------------------------------------------------------

def _reference_loss(pred, target, reduction="mean"):
    n, c, h, w = pred.shape
    p = ((pred.astype(jnp.float32) + 1.0) * 0.5).reshape(n * c, h, w)
    t = ((target.astype(jnp.float32) + 1.0) * 0.5).reshape(n * c, h, w)

    def edges(img):
        padded = jnp.pad(img, ((0, 0), (1, 1), (1, 1)))

        def win(di, dj):
            return padded[:, di:di + h, dj:dj + w]

        gx = (-win(0, 0) + win(0, 2)
              - 2.0 * win(1, 0) + 2.0 * win(1, 2)
              - win(2, 0) + win(2, 2))
        gy = (-win(0, 0) - 2.0 * win(0, 1) - win(0, 2)
              + win(2, 0) + 2.0 * win(2, 1) + win(2, 2))
        return jnp.sqrt(gx * gx + gy * gy + 1e-6)

    diff = jnp.abs(edges(p) - edges(t))
    return jnp.mean(diff) if reduction == "mean" else jnp.sum(diff)


if __name__ == "__main__":
    key = jax.random.PRNGKey(0)
    k1, k2 = jax.random.split(key)
    pred = jax.random.uniform(k1, (2, 4, 16, 16), jnp.float32, minval=-1.0, maxval=1.0)
    target = jax.random.uniform(k2, (2, 4, 16, 16), jnp.float32, minval=-1.0, maxval=1.0)

    loss = jax.block_until_ready(sobel_edge_loss(pred, target, reduction="mean"))
    ref = jax.block_until_ready(_reference_loss(pred, target, reduction="mean"))
    np.testing.assert_allclose(np.asarray(loss), np.asarray(ref), rtol=1e-4, atol=1e-6)

    print("KERNEL_OK")
</pallas_src>

<mosaic_0001>
module attributes {stable_mosaic.version = 11 : i64} {
  func.func @_sobel_loss_kernel(%arg0: i32, %arg1: memref<8x128xf32, #tpu.memory_space<vmem>>, %arg2: memref<8x128xf32, #tpu.memory_space<vmem>>, %arg3: memref<1x8x128xf32, #tpu.memory_space<vmem>>) attributes {dimension_semantics = [#tpu.dimension_semantics<parallel>], iteration_bounds = array<i64: 2>, scalar_prefetch = 0 : i64, scratch_operands = 0 : i64, tpu.core_type = #tpu.core_type<tc>, window_params = [{transform_indices = @transform_0, window_bounds = array<i64: 8, 128>}, {transform_indices = @transform_1, window_bounds = array<i64: 8, 128>}, {transform_indices = @transform_2, window_bounds = array<i64: 1, 8, 128>}]} {
    %0 = tpu.iota {dimensions = array<i32: 1>} : vector<8x128xi32>
    %1 = tpu.iota {dimensions = array<i32: 0>} : vector<8x128xi32>
    %c16_i32 = arith.constant 16 : i32
    %c0_i32 = arith.constant 0 : i32
    %2 = arith.cmpi eq, %c16_i32, %c0_i32 : i32
    %c1_i32 = arith.constant 1 : i32
    %3 = arith.select %2, %c1_i32, %c16_i32 : i32
    %4 = vector.broadcast %3 : i32 to vector<8x128xi32>
    %5 = arith.remsi %0, %4 : vector<8x128xi32>
    %c0_i32_0 = arith.constant 0 : i32
    %6 = vector.broadcast %c0_i32_0 : i32 to vector<8x128xi32>
    %7 = arith.cmpi ne, %5, %6 : vector<8x128xi32>
    %c0_i32_1 = arith.constant 0 : i32
    %8 = vector.broadcast %c0_i32_1 : i32 to vector<8x128xi32>
    %9 = arith.cmpi slt, %5, %8 : vector<8x128xi32>
    %c0_i32_2 = arith.constant 0 : i32
    %10 = arith.cmpi slt, %3, %c0_i32_2 : i32
    %11 = vector.broadcast %10 : i1 to vector<8x128xi1>
    %12 = vector.broadcast %11 : vector<8x128xi1> to vector<8x128xi1>
    %13 = arith.xori %9, %12 : vector<8x128xi1>
    %14 = arith.andi %13, %7 : vector<8x128xi1>
    %15 = vector.broadcast %3 : i32 to vector<8x128xi32>
    %16 = arith.addi %5, %15 : vector<8x128xi32>
    %17 = arith.select %14, %16, %5 : vector<8x128xi1>, vector<8x128xi32>
    %c0_i32_3 = arith.constant 0 : i32
    %18 = vector.broadcast %c0_i32_3 : i32 to vector<8x128xi32>
    %19 = arith.cmpi eq, %17, %18 : vector<8x128xi32>
    %c15_i32 = arith.constant 15 : i32
    %20 = vector.broadcast %c15_i32 : i32 to vector<8x128xi32>
    %21 = arith.cmpi eq, %17, %20 : vector<8x128xi32>
    %c16_i32_4 = arith.constant 16 : i32
    %22 = vector.broadcast %c16_i32_4 : i32 to vector<8x128xi32>
    %23 = arith.cmpi slt, %0, %22 : vector<8x128xi32>
    %c112_i32 = arith.constant 112 : i32
    %24 = vector.broadcast %c112_i32 : i32 to vector<8x128xi32>
    %25 = arith.cmpi sge, %0, %24 : vector<8x128xi32>
    %c2_i32 = arith.constant 2 : i32
    %c0_i32_5 = arith.constant 0 : i32
    %26 = arith.cmpi eq, %c2_i32, %c0_i32_5 : i32
    %c1_i32_6 = arith.constant 1 : i32
    %27 = arith.select %26, %c1_i32_6, %c2_i32 : i32
    %28 = vector.broadcast %27 : i32 to vector<8x128xi32>
    %29 = arith.remsi %1, %28 : vector<8x128xi32>
    %c0_i32_7 = arith.constant 0 : i32
    %30 = vector.broadcast %c0_i32_7 : i32 to vector<8x128xi32>
    %31 = arith.cmpi ne, %29, %30 : vector<8x128xi32>
    %c0_i32_8 = arith.constant 0 : i32
    %32 = vector.broadcast %c0_i32_8 : i32 to vector<8x128xi32>
    %33 = arith.cmpi slt, %29, %32 : vector<8x128xi32>
    %c0_i32_9 = arith.constant 0 : i32
    %34 = arith.cmpi slt, %27, %c0_i32_9 : i32
    %35 = vector.broadcast %34 : i1 to vector<8x128xi1>
    %36 = vector.broadcast %35 : vector<8x128xi1> to vector<8x128xi1>
    %37 = arith.xori %33, %36 : vector<8x128xi1>
    %38 = arith.andi %37, %31 : vector<8x128xi1>
    %39 = vector.broadcast %27 : i32 to vector<8x128xi32>
    %40 = arith.addi %29, %39 : vector<8x128xi32>
    %41 = arith.select %38, %40, %29 : vector<8x128xi1>, vector<8x128xi32>
    %c0_i32_10 = arith.constant 0 : i32
    %42 = vector.broadcast %c0_i32_10 : i32 to vector<8x128xi32>
    %43 = arith.cmpi eq, %41, %42 : vector<8x128xi32>
    %44 = arith.andi %43, %23 : vector<8x128xi1>
    %c2_i32_11 = arith.constant 2 : i32
    %c0_i32_12 = arith.constant 0 : i32
    %45 = arith.cmpi eq, %c2_i32_11, %c0_i32_12 : i32
    %c1_i32_13 = arith.constant 1 : i32
    %46 = arith.select %45, %c1_i32_13, %c2_i32_11 : i32
    %47 = vector.broadcast %46 : i32 to vector<8x128xi32>
    %48 = arith.remsi %1, %47 : vector<8x128xi32>
    %c0_i32_14 = arith.constant 0 : i32
    %49 = vector.broadcast %c0_i32_14 : i32 to vector<8x128xi32>
    %50 = arith.cmpi ne, %48, %49 : vector<8x128xi32>
    %c0_i32_15 = arith.constant 0 : i32
    %51 = vector.broadcast %c0_i32_15 : i32 to vector<8x128xi32>
    %52 = arith.cmpi slt, %48, %51 : vector<8x128xi32>
    %c0_i32_16 = arith.constant 0 : i32
    %53 = arith.cmpi slt, %46, %c0_i32_16 : i32
    %54 = vector.broadcast %53 : i1 to vector<8x128xi1>
    %55 = vector.broadcast %54 : vector<8x128xi1> to vector<8x128xi1>
    %56 = arith.xori %52, %55 : vector<8x128xi1>
    %57 = arith.andi %56, %50 : vector<8x128xi1>
    %58 = vector.broadcast %46 : i32 to vector<8x128xi32>
    %59 = arith.addi %48, %58 : vector<8x128xi32>
    %60 = arith.select %57, %59, %48 : vector<8x128xi1>, vector<8x128xi32>
    %c1_i32_17 = arith.constant 1 : i32
    %61 = vector.broadcast %c1_i32_17 : i32 to vector<8x128xi32>
    %62 = arith.cmpi eq, %60, %61 : vector<8x128xi32>
    %63 = arith.andi %62, %25 : vector<8x128xi1>
    %c0 = arith.constant 0 : index
    %c0_18 = arith.constant 0 : index
    %64 = vector.load %arg1[%c0, %c0_18] : memref<8x128xf32, #tpu.memory_space<vmem>>, vector<8x128xf32>
    %c1_i32_19 = arith.constant 1 : i32
    %65 = tpu.dynamic_rotate %64 by %c1_i32_19 dim 1 : vector<8x128xf32>, i32 -> vector<8x128xf32>
    %cst = arith.constant -1.000000e+00 : f32
    %66 = vector.broadcast %cst : f32 to vector<8x128xf32>
    %67 = arith.select %19, %66, %65 : vector<8x128xi1>, vector<8x128xf32>
    %c127_i32 = arith.constant 127 : i32
    %68 = tpu.dynamic_rotate %64 by %c127_i32 dim 1 : vector<8x128xf32>, i32 -> vector<8x128xf32>
    %cst_20 = arith.constant -1.000000e+00 : f32
    %69 = vector.broadcast %cst_20 : f32 to vector<8x128xf32>
    %70 = arith.select %21, %69, %68 : vector<8x128xi1>, vector<8x128xf32>
    %71 = arith.subf %70, %67 : vector<8x128xf32>
    %cst_21 = arith.constant 2.000000e+00 : f32
    %72 = vector.broadcast %cst_21 : f32 to vector<8x128xf32>
    %73 = arith.mulf %72, %64 : vector<8x128xf32>
    %74 = arith.addf %67, %73 : vector<8x128xf32>
    %75 = arith.addf %74, %70 : vector<8x128xf32>
    %c16_i32_22 = arith.constant 16 : i32
    %76 = tpu.dynamic_rotate %71 by %c16_i32_22 dim 1 : vector<8x128xf32>, i32 -> vector<8x128xf32>
    %c1_i32_23 = arith.constant 1 : i32
    %77 = tpu.dynamic_rotate %76 by %c1_i32_23 dim 0 : vector<8x128xf32>, i32 -> vector<8x128xf32>
    %78 = arith.select %23, %77, %76 : vector<8x128xi1>, vector<8x128xf32>
    %cst_24 = arith.constant 0.000000e+00 : f32
    %79 = vector.broadcast %cst_24 : f32 to vector<8x128xf32>
    %80 = arith.select %44, %79, %78 : vector<8x128xi1>, vector<8x128xf32>
    %cst_25 = arith.constant 2.000000e+00 : f32
    %81 = vector.broadcast %cst_25 : f32 to vector<8x128xf32>
    %82 = arith.mulf %81, %71 : vector<8x128xf32>
    %83 = arith.addf %80, %82 : vector<8x128xf32>
    %c112_i32_26 = arith.constant 112 : i32
    %84 = tpu.dynamic_rotate %71 by %c112_i32_26 dim 1 : vector<8x128xf32>, i32 -> vector<8x128xf32>
    %c7_i32 = arith.constant 7 : i32
    %85 = tpu.dynamic_rotate %84 by %c7_i32 dim 0 : vector<8x128xf32>, i32 -> vector<8x128xf32>
    %86 = arith.select %25, %85, %84 : vector<8x128xi1>, vector<8x128xf32>
    %cst_27 = arith.constant 0.000000e+00 : f32
    %87 = vector.broadcast %cst_27 : f32 to vector<8x128xf32>
    %88 = arith.select %63, %87, %86 : vector<8x128xi1>, vector<8x128xf32>
    %89 = arith.addf %83, %88 : vector<8x128xf32>
    %c112_i32_28 = arith.constant 112 : i32
    %90 = tpu.dynamic_rotate %75 by %c112_i32_28 dim 1 : vector<8x128xf32>, i32 -> vector<8x128xf32>
    %c7_i32_29 = arith.constant 7 : i32
    %91 = tpu.dynamic_rotate %90 by %c7_i32_29 dim 0 : vector<8x128xf32>, i32 -> vector<8x128xf32>
    %92 = arith.select %25, %91, %90 : vector<8x128xi1>, vector<8x128xf32>
    %cst_30 = arith.constant -4.000000e+00 : f32
    %93 = vector.broadcast %cst_30 : f32 to vector<8x128xf32>
    %94 = arith.select %63, %93, %92 : vector<8x128xi1>, vector<8x128xf32>
    %c16_i32_31 = arith.constant 16 : i32
    %95 = tpu.dynamic_rotate %75 by %c16_i32_31 dim 1 : vector<8x128xf32>, i32 -> vector<8x128xf32>
    %c1_i32_32 = arith.constant 1 : i32
    %96 = tpu.dynamic_rotate %95 by %c1_i32_32 dim 0 : vector<8x128xf32>, i32 -> vector<8x128xf32>
    %97 = arith.select %23, %96, %95 : vector<8x128xi1>, vector<8x128xf32>
    %cst_33 = arith.constant -4.000000e+00 : f32
    %98 = vector.broadcast %cst_33 : f32 to vector<8x128xf32>
    %99 = arith.select %44, %98, %97 : vector<8x128xi1>, vector<8x128xf32>
    %100 = arith.subf %94, %99 : vector<8x128xf32>
    %101 = arith.mulf %89, %89 : vector<8x128xf32>
    %102 = arith.mulf %100, %100 : vector<8x128xf32>
    %103 = arith.addf %101, %102 : vector<8x128xf32>
    %cst_34 = arith.constant 4.000000e-06 : f32
    %104 = vector.broadcast %cst_34 : f32 to vector<8x128xf32>
    %105 = arith.addf %103, %104 : vector<8x128xf32>
    %106 = math.sqrt %105 : vector<8x128xf32>
    %c0_35 = arith.constant 0 : index
    %c0_36 = arith.constant 0 : index
    %107 = vector.load %arg2[%c0_35, %c0_36] : memref<8x128xf32, #tpu.memory_space<vmem>>, vector<8x128xf32>
    %c1_i32_37 = arith.constant 1 : i32
    %108 = tpu.dynamic_rotate %107 by %c1_i32_37 dim 1 : vector<8x128xf32>, i32 -> vector<8x128xf32>
    %cst_38 = arith.constant -1.000000e+00 : f32
    %109 = vector.broadcast %cst_38 : f32 to vector<8x128xf32>
    %110 = arith.select %19, %109, %108 : vector<8x128xi1>, vector<8x128xf32>
    %c127_i32_39 = arith.constant 127 : i32
    %111 = tpu.dynamic_rotate %107 by %c127_i32_39 dim 1 : vector<8x128xf32>, i32 -> vector<8x128xf32>
    %cst_40 = arith.constant -1.000000e+00 : f32
    %112 = vector.broadcast %cst_40 : f32 to vector<8x128xf32>
    %113 = arith.select %21, %112, %111 : vector<8x128xi1>, vector<8x128xf32>
    %114 = arith.subf %113, %110 : vector<8x128xf32>
    %cst_41 = arith.constant 2.000000e+00 : f32
    %115 = vector.broadcast %cst_41 : f32 to vector<8x128xf32>
    %116 = arith.mulf %115, %107 : vector<8x128xf32>
    %117 = arith.addf %110, %116 : vector<8x128xf32>
    %118 = arith.addf %117, %113 : vector<8x128xf32>
    %c16_i32_42 = arith.constant 16 : i32
    %119 = tpu.dynamic_rotate %114 by %c16_i32_42 dim 1 : vector<8x128xf32>, i32 -> vector<8x128xf32>
    %c1_i32_43 = arith.constant 1 : i32
    %120 = tpu.dynamic_rotate %119 by %c1_i32_43 dim 0 : vector<8x128xf32>, i32 -> vector<8x128xf32>
    %121 = arith.select %23, %120, %119 : vector<8x128xi1>, vector<8x128xf32>
    %cst_44 = arith.constant 0.000000e+00 : f32
    %122 = vector.broadcast %cst_44 : f32 to vector<8x128xf32>
    %123 = arith.select %44, %122, %121 : vector<8x128xi1>, vector<8x128xf32>
    %cst_45 = arith.constant 2.000000e+00 : f32
    %124 = vector.broadcast %cst_45 : f32 to vector<8x128xf32>
    %125 = arith.mulf %124, %114 : vector<8x128xf32>
    %126 = arith.addf %123, %125 : vector<8x128xf32>
    %c112_i32_46 = arith.constant 112 : i32
    %127 = tpu.dynamic_rotate %114 by %c112_i32_46 dim 1 : vector<8x128xf32>, i32 -> vector<8x128xf32>
    %c7_i32_47 = arith.constant 7 : i32
    %128 = tpu.dynamic_rotate %127 by %c7_i32_47 dim 0 : vector<8x128xf32>, i32 -> vector<8x128xf32>
    %129 = arith.select %25, %128, %127 : vector<8x128xi1>, vector<8x128xf32>
    %cst_48 = arith.constant 0.000000e+00 : f32
    %130 = vector.broadcast %cst_48 : f32 to vector<8x128xf32>
    %131 = arith.select %63, %130, %129 : vector<8x128xi1>, vector<8x128xf32>
    %132 = arith.addf %126, %131 : vector<8x128xf32>
    %c112_i32_49 = arith.constant 112 : i32
    %133 = tpu.dynamic_rotate %118 by %c112_i32_49 dim 1 : vector<8x128xf32>, i32 -> vector<8x128xf32>
    %c7_i32_50 = arith.constant 7 : i32
    %134 = tpu.dynamic_rotate %133 by %c7_i32_50 dim 0 : vector<8x128xf32>, i32 -> vector<8x128xf32>
    %135 = arith.select %25, %134, %133 : vector<8x128xi1>, vector<8x128xf32>
    %cst_51 = arith.constant -4.000000e+00 : f32
    %136 = vector.broadcast %cst_51 : f32 to vector<8x128xf32>
    %137 = arith.select %63, %136, %135 : vector<8x128xi1>, vector<8x128xf32>
    %c16_i32_52 = arith.constant 16 : i32
    %138 = tpu.dynamic_rotate %118 by %c16_i32_52 dim 1 : vector<8x128xf32>, i32 -> vector<8x128xf32>
    %c1_i32_53 = arith.constant 1 : i32
    %139 = tpu.dynamic_rotate %138 by %c1_i32_53 dim 0 : vector<8x128xf32>, i32 -> vector<8x128xf32>
    %140 = arith.select %23, %139, %138 : vector<8x128xi1>, vector<8x128xf32>
    %cst_54 = arith.constant -4.000000e+00 : f32
    %141 = vector.broadcast %cst_54 : f32 to vector<8x128xf32>
    %142 = arith.select %44, %141, %140 : vector<8x128xi1>, vector<8x128xf32>
    %143 = arith.subf %137, %142 : vector<8x128xf32>
    %144 = arith.mulf %132, %132 : vector<8x128xf32>
    %145 = arith.mulf %143, %143 : vector<8x128xf32>
    %146 = arith.addf %144, %145 : vector<8x128xf32>
    %cst_55 = arith.constant 4.000000e-06 : f32
    %147 = vector.broadcast %cst_55 : f32 to vector<8x128xf32>
    %148 = arith.addf %146, %147 : vector<8x128xf32>
    %149 = math.sqrt %148 : vector<8x128xf32>
    %150 = arith.subf %106, %149 : vector<8x128xf32>
    %151 = math.absf %150 : vector<8x128xf32>
    %152 = vector.shape_cast %151 : vector<8x128xf32> to vector<1x8x128xf32>
    %cst_56 = arith.constant dense<0.000000e+00> : vector<8x128xf32>
    %153 = vector.multi_reduction <add>, %152, %cst_56 [0] : vector<1x8x128xf32> to vector<8x128xf32>
    %cst_57 = arith.constant 5.000000e-01 : f32
    %154 = vector.broadcast %cst_57 : f32 to vector<8x128xf32>
    %155 = arith.mulf %154, %153 : vector<8x128xf32>
    %156 = vector.shape_cast %155 : vector<8x128xf32> to vector<1x8x128xf32>
    %c0_58 = arith.constant 0 : index
    %c0_59 = arith.constant 0 : index
    %c0_60 = arith.constant 0 : index
    %157 = vector.load %arg3[%c0_58, %c0_59, %c0_60] : memref<1x8x128xf32, #tpu.memory_space<vmem>>, vector<1x8x128xf32>
    tpu.vector_store %arg3[%c0_58, %c0_59, %c0_60], %156 {strides = array<i32>} : memref<1x8x128xf32, #tpu.memory_space<vmem>>, vector<1x8x128xf32>,
    return
  }
  func.func @transform_0(%arg0: i32) -> (i32, i32) {
    %c0_i32 = arith.constant 0 : i32
    %c0_i32_0 = arith.constant 0 : i32
    return %arg0, %c0_i32 : i32, i32
  }
  func.func @transform_1(%arg0: i32) -> (i32, i32) {
    %c0_i32 = arith.constant 0 : i32
    %c0_i32_0 = arith.constant 0 : i32
    return %arg0, %c0_i32 : i32, i32
  }
  func.func @transform_2(%arg0: i32) -> (i32, i32, i32) {
    %c0_i32 = arith.constant 0 : i32
    %c0_i32_0 = arith.constant 0 : i32
    %c0_i32_1 = arith.constant 0 : i32
    return %arg0, %c0_i32, %c0_i32_0 : i32, i32, i32
  }
}

</mosaic_0001>

<bundles_post_ra>
// kernel: tpu_custom_call.1
= control target key start
LH: loop header
LB: loop body
LE: loop exit
PB: predicated region body
PF: predicated region fallthrough
CT: control target
= control target key end

     0   :  { %7 = vsyncpa [#allocation3], 0  ;;  %s906_s0 = inlined_call_operand.hbm [shape: f32[16,128], index: 0, kind: input, shape index: {}]   ;;  %s907_s1 = inlined_call_operand.hbm [shape: f32[16,128], index: 1, kind: input, shape index: {}]   ;;  %s908_s2 = inlined_call_operand.hbm [shape: f32[2,8,128], index: 2, kind: output, shape index: {}]  }
   0x1   :  { %9 = vsyncpa [#allocation3 + $0x1], 0 }
   0x2   :  { %10 = vsyncpa [#allocation6], 0 }
   0x3   :  { %12 = vsyncpa [#allocation6 + $0x1], 0 }
   0x4   :  { %13 = vsyncpa [#allocation4], 0 }
   0x5   :  { %15 = vsyncpa [#allocation4 + $0x1], 0  ;;  %s658_s9 = smov 0   ;;  %s660_s10 = smov 0  }
   0x6   :  { %s662_s11 = smov 0   ;;  %s664_s12 = smov 0  }
   0x7 LB: > { %s679_s13 = sadd.s32 4294967295, %s634_s12   ;;  %s436_s14 = sadd.s32 4294967294, %s634_s12   ;;  %s634_s12 = sphi %s664_s12, %s931_s12   ;;  %s630_s11 = sphi %s662_s11, %s930_s11   ;;  %s626_s10 = sphi %s660_s10, %s929_s10   ;;  %s622_s9 = sphi %s658_s9, %s928_s9  }
   0x8   : > { %s683_s15 = sadd.s32 1, %s634_s12   ;;  %s28_s16 = sadd.s32 1, %s630_s11 }
   0x9   : > { %s25_s17 = ssub.s32 %s634_s12, %s683_s15  ;;  %p35_p0 = scmp.ne.s32.totalorder %s630_s11, %s626_s10 }
   0xa   : > { %p26_p1 = scmp.eq.s32.totalorder %s25_s17, 0  ;;  %p36_p2 = scmp.eq.s32.totalorder %s634_s12, 0 }
   0xb   : > { %p41_p3 = scmp.ne.s32.totalorder %s626_s10, %s622_s9  ;;  %p42_p4 = scmp.eq.s32.totalorder %s679_s13, 0 }
   0xc   : > { %s695_s18 = scalar_select %p26_p1, %s630_s11, %s28_s16  }
   0xd   : > { %p697_p5 = por %p36_p2, %p35_p0  ;;  %p701_p6 = por %p42_p4, %p41_p3 }
   0xe   : > { %p91_p7 = scmp.eq.s32.totalorder %s679_s13, 1  ;;  %p97_p8 = scmp.eq.s32.totalorder %s436_s14, 1 }
   0xf   : > { %s912_s20 = scalar_select %p701_p6, 1, 0 }
  0x10   : > { %p468_p10 = scmp.lt.s32.totalorder %s634_s12, 2  ;;  %p708_p11 = por %p91_p7, %p35_p0 }
  0x11   : > { %p712_p12 = por %p97_p8, %p41_p3  ;;  %s717_s23 = sand.u32 1, %s630_s11  }
  0x12   : > { %s913_s21 = scalar_select %p708_p11, 1, 0 }
  0x13   : > { %s914_s22 = scalar_select %p712_p12, 1, 0 }
  0x14   : > { %s440_s24 = sshll.u32 %s634_s12, 7  ;;  %s439_s25 = sshll.u32 %s717_s23, 3 }
  0x15   : > { %s726_s28 = scalar_lea.hbm %s906_s0, %s440_s24  ;;  %s121_s29 = scalar_lea.vmem [#allocation2], %s439_s25 }
  0x16   : > { %s128_s30 = sshll.u32 %s121_s29, 4  ;;  %p732_p13 = pnand %p468_p10, %p697_p5  ;;  %s736_s30 = int_to_ptr.vmem [resolvable:$true] %s128_s30 }
  0x17   : > { %s118_s4 = scalar_lea.sflag [#allocation3], %s717_s23  ;;  %s510_s5 = scalar_lea.hbm %s726_s28, 128 }
  0x18   : > { %p511_p2 = scmp.ne.s32.totalorder %s726_s28, %s510_s5  ;;  %p512_p3 = pneg %p732_p13 }
  0x19   : > { %s515_s8 = scalar_lea.hbm %s906_s0, 256  ;;  %p516_p5 = scmp.lt.s32.totalorder %s726_s28, %s906_s0 }
  0x1a   : > { %p513_p4 = pnand %p512_p3, %p511_p2  ;;  %p517_p8 = scmp.lt.s32.totalorder %s515_s8, %s510_s5 }
  0x1c   : > { %p514_p7 = pneg %p513_p4  ;;  %p518_p10 = por %p517_p8, %p516_p5 }
  0x1e   : > { %p519_p9 = pnand %p518_p10, %p514_p7 }
  0x20   : > { %522 = shalt.err (!%p519_p9)
}
  0x21   : > { %s523_s17 = scalar_lea.vmem %s736_s30, 128  ;;  %s636_s19 = smov [#allocation2]  }
  0x22   : > { %p524_p0 = scmp.ne.s32.totalorder %s736_s30, %s523_s17  ;;  %s528_s26 = sshll.u32 %s636_s19, 4  ;;  %s529_s26 = int_to_ptr.vmem [resolvable:$false] %s528_s26 }
  0x23   : > { %s530_s27 = scalar_lea.vmem %s529_s26, 256  ;;  %p531_p1 = scmp.lt.s32.totalorder %s736_s30, %s529_s26 }
  0x24   : > { %p526_p2 = pnand %p524_p0, %p512_p3  ;;  %p532_p12 = scmp.lt.s32.totalorder %s530_s27, %s523_s17 }
  0x26   : > { %p527_p4 = pneg %p526_p2  ;;  %p533_p11 = por %p532_p12, %p531_p1 }
  0x28   : > { %p534_p5 = pnand %p533_p11, %p527_p4 }
  0x2a   : > { %537 = shalt.err (!%p534_p5)
}
  0x2b   : > { %460 = dma.hbm_to_vmem [thread:$0]  (!%p732_p13), %s726_s28, 128, %s736_s30, %s118_s4  }
  0x2c   : > { %p916_p9 = scmp.lt.s32.totalorder %s634_s12, 3  ;;  %p917_p0 = scmp.ge.s32.totalorder %s634_s12, 1 }
  0x2d   : > { %s778_s7 = scalar_lea.hbm %s907_s1, %s440_s24  ;;  %s139_s8 = scalar_lea.vmem [#allocation5], %s439_s25 }
  0x2e   : > { %p769_p7 = pnand %p917_p0, %p916_p9  ;;  %s146_s14 = sshll.u32 %s139_s8, 4  ;;  %s147_s14 = int_to_ptr.vmem [resolvable:$true] %s146_s14 }
  0x2f   : > { %s136_s28 = scalar_lea.sflag [#allocation6], %s717_s23  ;;  %s538_s30 = scalar_lea.hbm %s778_s7, 128 }
  0x30   : > { %s918_s29 = scalar_select %p769_p7, 1, 0 }
  0x31   : > { %p539_p11 = scmp.ne.s32.totalorder %s778_s7, %s538_s30  ;;  %s543_s17 = scalar_lea.hbm %s907_s1, 256 }
  0x32   : > { %p544_p8 = scmp.lt.s32.totalorder %s778_s7, %s907_s1  ;;  %p545_p10 = scmp.lt.s32.totalorder %s543_s17, %s538_s30 }
  0x33   : > { %p541_p12 = pnand %p539_p11, %p512_p3 }
  0x34   : > { %p546_p2 = por %p545_p10, %p544_p8 }
  0x35   : > { %p542_p1 = pneg %p541_p12 }
  0x37   : > { %p547_p4 = pnand %p546_p2, %p542_p1 }
  0x39   : > { %550 = shalt.err (!%p547_p4)
}
  0x3a   : > { %s551_s25 = scalar_lea.vmem %s147_s14, 128  ;;  %s637_s23 = smov [#allocation5]  }
  0x3b   : > { %p552_p5 = scmp.ne.s32.totalorder %s147_s14, %s551_s25  ;;  %s556_s26 = sshll.u32 %s637_s23, 4  ;;  %s557_s26 = int_to_ptr.vmem [resolvable:$false] %s556_s26 }
  0x3c   : > { %s558_s27 = scalar_lea.vmem %s557_s26, 256  ;;  %p559_p11 = scmp.lt.s32.totalorder %s147_s14, %s557_s26 }
  0x3d   : > { %p554_p9 = pnand %p552_p5, %p512_p3  ;;  %p560_p12 = scmp.lt.s32.totalorder %s558_s27, %s551_s25 }
  0x3f   : > { %p555_p0 = pneg %p554_p9  ;;  %p561_p6 = por %p560_p12, %p559_p11 }
  0x41   : > { %p562_p7 = pnand %p561_p6, %p555_p0 }
  0x43   : > { %565 = shalt.err (!%p562_p7)
}
  0x44   : > { %463 = dma.hbm_to_vmem [thread:$0]  (!%p732_p13), %s778_s7, 128, %s147_s14, %s136_s28  }
  0x45   : > { %p919_p1 = scmp.ne.s32.totalorder %s918_s29, 0 }
  0x46   : > { %s804_s5 = sand.u32 (!%p919_p1), 1, %s626_s10   ;;  %p920_p6 = scmp.ne.s32.totalorder (!%p919_p1), %s912_s20, 0 }
  0x47   : > { %155 = sbr.rel (%p919_p1) target bundleno = 378 (0x17a), region = 28  ;;  %s807_s6 = sshll.u32 (!%p919_p1), %s804_s5, 3 }
  0x48   : > { %s158_s8 = scalar_lea.sflag (!%p919_p1), [#allocation3], %s804_s5  ;;  %s161_s30 = scalar_lea.vmem (!%p919_p1), [#allocation2], %s807_s6 }
  0x4c   : > { %609 = dma.done.wait (%p920_p6), %s158_s8, 128  }
  0x4d   : > { %611 = vsyncadd (%p920_p6), %s158_s8, 4294967168  ;;  %s167_s3 = scalar_lea.sflag [#allocation6], %s804_s5  ;;  %s170_s29 = scalar_lea.vmem [#allocation5], %s807_s6 }
  0x4e   : > { %613 = dma.done.wait (%p920_p6), %s167_s3, 128  }
  0x4f   : > { %615 = vsyncadd (%p920_p6), %s167_s3, 4294967168  ;;  %v278_v0 = vld [vmem:[%s170_s29] sm:$0xff]  ;;  %v232_v1 = vld [vmem:[%s161_s30] sm:$0xff]  ;;  %s638_s7 = smov 1   ;;  %s639_s14 = smov 127   ;;  %v196_v2 = vlaneseq }
  0x50   : > { %279 = vrot.lane.b32.xlu1 %v278_v0, %s638_s7  ;;  %233 = vrot.lane.b32.xlu0 %v232_v1, %s638_s7  ;;  %v240_v15 = vmul.f32 2.0, %v232_v1  ;;  %s640_s20 = smov 16   ;;  %v286_v16 = vmul.f32 2.0, %v278_v0  ;;  %s641_s28 = smov 112  }
  0x51   : > { %v821_v3 = vand.u32 127, %v196_v2  ;;  %v199_v21 = vshrl.u32 %v196_v2, 7  ;;  %s448_s4 = sshll.u32 %s679_s13, 7  ;;  %s195_s16 = scalar_lea.vmem [#allocation7], %s807_s6 }
  0x52   : > { %s343_s17 = sshll.u32 %s195_s16, 4  ;;  %s341_s25 = scalar_lea.hbm %s908_s2, %s448_s4  ;;  %s344_s17 = int_to_ptr.vmem [resolvable:$true] %s343_s17 }
  0x53   : > { %v204_v4 = vand.u32 15, %v821_v3  ;;  %v220_v22 = vand.u32 1, %v199_v21  ;;  %vm214_vm2 = vcmp.lt.s32.totalorder %v821_v3, 16  ;;  %vm215_vm5 = vcmp.ge.s32.totalorder %v821_v3, 112  ;;  %s330_s23 = scalar_lea.sflag [#allocation4], %s804_s5  ;;  %s566_s26 = scalar_lea.vmem %s344_s17, 128 }
  0x54   : > { %282 = vrot.lane.b32.xlu1 %v278_v0, %s639_s14  ;;  %236 = vrot.lane.b32.xlu0 %v232_v1, %s639_s14  ;;  %p567_p13 = scmp.ne.s32.totalorder %s344_s17, %s566_s26  ;;  %p925_p3 = scmp.ne.s32.totalorder %s913_s21, 0 }
  0x55   : > { %vm212_vm0 = vcmp.eq.s32.totalorder %v204_v4, 0  ;;  %vm213_vm1 = vcmp.eq.s32.totalorder %v204_v4, 15  ;;  %vm228_vm3 = vcmp.eq.s32.totalorder %v220_v22, 0  ;;  %vm230_vm6 = vcmp.eq.s32.totalorder %v220_v22, 1  ;;  %s642_s27 = smov [#allocation7]  }
  0x56   : > { %vm827_vm4 = vmand %vm228_vm3, %vm214_vm2  ;;  %p568_p7 = pnand %p567_p13, %p925_p3  ;;  %s570_s8 = sshll.u32 %s642_s27, 4  ;;  %s571_s8 = int_to_ptr.vmem [resolvable:$false] %s570_s8 }
  0x57   : > { %vm842_vm7 = vmand %vm230_vm6, %vm215_vm5  ;;  %s572_s13 = scalar_lea.vmem %s571_s8, 256  ;;  %p573_p10 = scmp.lt.s32.totalorder %s344_s17, %s571_s8 }
  0x58   : > { %p569_p8 = pneg %p568_p7  ;;  %p574_p2 = scmp.lt.s32.totalorder %s572_s13, %s566_s26 }
  0x5a   : > { %p575_p4 = por %p574_p2, %p573_p10 }
  0x5c   : > { %p576_p5 = pnand %p575_p4, %p569_p8 }
  0xc2   : > { %v280_v5 = vpop.permute.xlu1 %279  ;;  %v234_v6 = vpop.permute.xlu0 %233 }
  0xc3   : > { %v281_v9 = vsel %vm212_vm0, -1.0, %v280_v5  ;;  %v235_v10 = vsel %vm212_vm0, -1.0, %v234_v6 }
  0xc4   : > { %v241_v17 = vadd.f32 %v240_v15, %v235_v10  ;;  %v287_v19 = vadd.f32 %v286_v16, %v281_v9 }
  0xc6   : > { %v283_v7 = vpop.permute.xlu1 %282  ;;  %v237_v8 = vpop.permute.xlu0 %236 }
  0xc7   : > { %v284_v11 = vsel %vm213_vm1, -1.0, %v283_v7  ;;  %v238_v12 = vsel %vm213_vm1, -1.0, %v237_v8 }
  0xc8   : > { %v285_v13 = vsub.f32 %v284_v11, %v281_v9  ;;  %v239_v14 = vsub.f32 %v238_v12, %v235_v10  ;;  %v242_v18 = vadd.f32 %v241_v17, %v238_v12  ;;  %v288_v20 = vadd.f32 %v287_v19, %v284_v11 }
  0xca   : > { %289 = vrot.lane.b32.xlu1 %v285_v13, %s640_s20  ;;  %243 = vrot.lane.b32.xlu0 %v239_v14, %s640_s20  ;;  %v294_v29 = vmul.f32 2.0, %v285_v13  ;;  %v248_v31 = vmul.f32 2.0, %v239_v14 }
  0xce   : > { %296 = vrot.lane.b32.xlu1 %v285_v13, %s641_s28  ;;  %250 = vrot.lane.b32.xlu0 %v239_v14, %s641_s28 }
  0xd2   : > { %261 = vrot.lane.b32.xlu0 %v242_v18, %s640_s20  ;;  %256 = vrot.lane.b32.xlu1 %v242_v18, %s641_s28 }
  0xd6   : > { %302 = vrot.lane.b32.xlu0 %v288_v20, %s641_s28  ;;  %307 = vrot.lane.b32.xlu1 %v288_v20, %s640_s20 }
 0x13c   : > { %v290_v23 = vpop.permute.xlu1 %289  ;;  %v244_v24 = vpop.permute.xlu0 %243 }
 0x13d   : > { %v291_v26 = vrot.slane %v290_v23, 7  ;;  %v245_v27 = vrot.slane %v244_v24, 7 }
 0x13f   : > { %v292_v28 = vsel %vm214_vm2, %v291_v26, %v290_v23  ;;  %v246_v30 = vsel %vm214_vm2, %v245_v27, %v244_v24 }
 0x140   : > { %v293_v32 = vsel %vm827_vm4, 0.0, %v292_v28  ;;  %v247_v33 = vsel %vm827_vm4, 0.0, %v246_v30  ;;  %v297_v34 = vpop.permute.xlu1 %296  ;;  %v251_v35 = vpop.permute.xlu0 %250 }
 0x141   : > { %v295_v36 = vadd.f32 %v294_v29, %v293_v32  ;;  %v249_v37 = vadd.f32 %v248_v31, %v247_v33  ;;  %v298_v39 = vrot.slane %v297_v34, 1  ;;  %v252_v40 = vrot.slane %v251_v35, 1 }
 0x143   : > { %v299_v41 = vsel %vm215_vm5, %v298_v39, %v297_v34  ;;  %v253_v42 = vsel %vm215_vm5, %v252_v40, %v251_v35 }
 0x144   : > { %v300_v43 = vsel %vm842_vm7, 0.0, %v299_v41  ;;  %v254_v44 = vsel %vm842_vm7, 0.0, %v253_v42  ;;  %v262_v45 = vpop.permute.xlu0 %261  ;;  %v257_v46 = vpop.permute.xlu1 %256 }
 0x145   : > { %v301_v47 = vadd.f32 %v300_v43, %v295_v36  ;;  %v255_v48 = vadd.f32 %v254_v44, %v249_v37  ;;  %v263_v49 = vrot.slane %v262_v45, 7  ;;  %v258_v50 = vrot.slane %v257_v46, 1 }
 0x147   : > { %v264_v51 = vsel %vm214_vm2, %v263_v49, %v262_v45  ;;  %v259_v52 = vsel %vm215_vm5, %v258_v50, %v257_v46  ;;  %v267_v60 = vmul.f32 %v255_v48, %v255_v48  ;;  %v313_v5 = vmul.f32 %v301_v47, %v301_v47 }
 0x148   : > { %v265_v53 = vsel %vm827_vm4, -4.0, %v264_v51  ;;  %v260_v54 = vsel %vm842_vm7, -4.0, %v259_v52  ;;  %v303_v55 = vpop.permute.xlu0 %302  ;;  %v308_v56 = vpop.permute.xlu1 %307 }
 0x149   : > { %v266_v57 = vsub.f32 %v260_v54, %v265_v53  ;;  %v304_v58 = vrot.slane %v303_v55, 1  ;;  %v309_v59 = vrot.slane %v308_v56, 7 }
 0x14b   : > { %v268_v61 = vmul.f32 %v266_v57, %v266_v57  ;;  %v305_v62 = vsel %vm215_vm5, %v304_v58, %v303_v55  ;;  %v310_v63 = vsel %vm214_vm2, %v309_v59, %v308_v56 }
 0x14c   : > { %v306_v0 = vsel %vm842_vm7, -4.0, %v305_v62  ;;  %v311_v1 = vsel %vm827_vm4, -4.0, %v310_v63 }
 0x14d   : > { %v269_v2 = vadd.f32 %v268_v61, %v267_v60  ;;  %v312_v4 = vsub.f32 %v306_v0, %v311_v1 }
 0x14f   : > { %v270_v6 = vadd.f32 4e-06, %v269_v2  ;;  %v314_v7 = vmul.f32 %v312_v4, %v312_v4 }
 0x151   : > { %506 = vrsqrt.f32 %v270_v6  ;;  %v315_v8 = vadd.f32 %v314_v7, %v313_v5  ;;  %vm273_vm8 = vcmp.eq.f32.partialorder %v270_v6, inf  ;;  %v276_v14 = vand.u32 2147483648, %v270_v6 }
 0x152   : > { %vm275_vm10 = vcmp.eq.f32.partialorder %v270_v6, 0.0 }
 0x153   : > { %v316_v9 = vadd.f32 4e-06, %v315_v8 }
 0x155   : > { %508 = vrsqrt.f32 %v316_v9  ;;  %vm319_vm9 = vcmp.eq.f32.partialorder %v316_v9, inf  ;;  %v322_v15 = vand.u32 2147483648, %v316_v9  ;;  %vm321_vm11 = vcmp.eq.f32.partialorder %v316_v9, 0.0 }
 0x15e   : > { %v507_v10 = vpop.eup %506 }
 0x15f   : > { %v272_v3 = vmul.f32 %v507_v10, %v270_v6 }
 0x161   : > { %v274_v12 = vsel %vm273_vm8, %v270_v6, %v272_v3 }
 0x162   : > { %v509_v11 = vpop.eup %508  ;;  %v277_v17 = vsel %vm275_vm10, %v276_v14, %v274_v12 }
 0x163   : > { %v318_v13 = vmul.f32 %v509_v11, %v316_v9 }
 0x165   : > { %v320_v16 = vsel %vm319_vm9, %v316_v9, %v318_v13 }
 0x166   : > { %v323_v18 = vsel %vm321_vm11, %v322_v15, %v320_v16 }
 0x167   : > { %v324_v19 = vsub.f32 %v277_v17, %v323_v18 }
 0x169   : > { %v325_v20 = vand.u32 2147483647, %v324_v19 }
 0x16b   : > { %v327_v21 = vmul.f32 0.5, %v325_v20 }
 0x16d   : > { %328 = vst [vmem:[%s195_s16] sm:$0xff] %v327_v21 }
 0x16e   : > { %579 = shalt.err (!%p576_p5)
}
 0x16f   : > { %s580_s6 = scalar_lea.hbm %s341_s25, 128  ;;  %s584_s3 = scalar_lea.hbm %s908_s2, 256 }
 0x170   : > { %p581_p9 = scmp.ne.s32.totalorder %s341_s25, %s580_s6  ;;  %p585_p12 = scmp.lt.s32.totalorder %s341_s25, %s908_s2 }
 0x171   : > { %p586_p1 = scmp.lt.s32.totalorder %s584_s3, %s580_s6 }
 0x172   : > { %p582_p0 = pnand %p581_p9, %p925_p3 }
 0x173   : > { %p587_p6 = por %p586_p1, %p585_p12 }
 0x174   : > { %p583_p11 = pneg %p582_p0 }
 0x176   : > { %p588_p13 = pnand %p587_p6, %p583_p11 }
 0x178   : > { %591 = shalt.err (!%p588_p13)
}
 0x179   : > { %455 = dma.vmem_to_hbm [thread:$0]  (%p925_p3), %s344_s17, 128, %s341_s25, %s330_s23  }
 0x17a PF: > { %s355_s14 = sand.u32 1, %s622_s9   ;;  %p926_p7 = scmp.ne.s32.totalorder %s914_s22, 0 }
 0x17b   : > { %p927_p8 = scmp.ge.s32.totalorder %s634_s12, 2  ;;  %s356_s20 = scalar_lea.sflag [#allocation4], %s355_s14 }
 0x17d   : > { %p465_p10 = pnand %p927_p8, %p926_p7 }
 0x17f   : > { %p466_p2 = pneg %p465_p10 }
 0x181   : > { %617 = dma.done.wait (%p466_p2), %s356_s20, 128  }
 0x182   : > { %619 = vsyncadd (%p466_p2), %s356_s20, 4294967168  ;;  %p18_p4 = scmp.ge.s32.totalorder %s683_s15, 4   ;;  %s928_s9 = smov %s626_s10 }
 0x183   : > { %s929_s10 = smov %s630_s11  ;;  %s930_s11 = smov %s695_s18 }
 0x184   : > { %s931_s12 = smov %s683_s15  ;;  %20 = sbr.rel (!%p18_p4) target bundleno = 7 (0x7), region = 86 }
 0x189   :  { %361 = vsyncpa [#allocation3], 1 }
 0x18a   :  { %363 = vsyncpa [#allocation3 + $0x1], 1 }
 0x18b   :  { %364 = vsyncpa [#allocation6], 1 }
 0x18c   :  { %366 = vsyncpa [#allocation6 + $0x1], 1 }
 0x18d   :  { %367 = vsyncpa [#allocation4], 1 }
 0x18e   :  { %369 = vsyncpa [#allocation4 + $0x1], 1 }

</bundles_post_ra>
